<compile_context>
chip_gen: v5e
topology: v5e:2x2
jax: 0.10.0
libtpu: 0.0.40
codegen_flags: <defaults>
</compile_context>

<pallas_src>
import jax
import jax.numpy as jnp
from jax.experimental import pallas as pl
from jax.experimental.pallas import tpu as pltpu


def _round_up(x, m):
    return -(-x // m) * m


def mean_pool_kernel(x_ref, inv_len_ref, o_ref, acc_ref):
    # x_ref:       (B_BLK, T_BLK, D_BLK) input tile
    # inv_len_ref: (B_BLK, 1) f32, precomputed 1/length per batch row
    # o_ref:       (B_BLK, D_BLK) output tile (resident across the T axis)
    # acc_ref:     (B_BLK, D_BLK) f32 scratch accumulator
    t = pl.program_id(2)

    @pl.when(t == 0)
    def _():
        acc_ref[...] = jnp.zeros_like(acc_ref)

    acc_ref[...] += jnp.sum(x_ref[...].astype(jnp.float32), axis=1)

    @pl.when(t == pl.num_programs(2) - 1)
    def _():
        o_ref[...] = (acc_ref[...] * inv_len_ref[...]).astype(o_ref.dtype)


def mean_pooling(x, lengths, batch_first=True, max_block_bytes=2 * 1024 * 1024):
    """Pallas equivalent of MeanPooling.forward((x, lengths))."""
    if not batch_first:
        x = jnp.swapaxes(x, 0, 1)          # (T, B, D) -> (B, T, D)

    B, T, D = x.shape
    lengths_f = lengths.astype(jnp.float32)

    # ---- batch block: multiple of 8 for sublane-dense output stores when
    #      B >= 8; for tiny B use the whole batch (avoids inflating input DMA).
    if B >= 8:
        B_BLK = 8
        B_pad = _round_up(B, 8)
    else:
        B_BLK = B
        B_pad = B

    # ---- feature block: split only when D is large and 128-aligned
    #      (lane-dense); gives the v7x megacore a second parallel axis.
    if D % 128 == 0 and D >= 1024:
        D_BLK = 512 if D % 512 == 0 else (256 if D % 256 == 0 else 128)
    else:
        D_BLK = D

    # ---- time block: cap per-buffer bytes so double-buffering stays well
    #      under the scoped VMEM limit on every TPU generation.
    itemsize = jnp.dtype(x.dtype).itemsize
    t_cap = max(8, (max_block_bytes // (B_BLK * D_BLK * itemsize)) // 8 * 8)
    T_pad8 = _round_up(max(T, 1), 8)
    num_t = -(-T_pad8 // t_cap)
    T_BLK = _round_up(-(-T_pad8 // num_t), 8)
    T_pad = T_BLK * num_t

    # Zero padding: zeros don't change the sum; padded batch rows are sliced off.
    if (B_pad, T_pad) != (B, T):
        x = jnp.pad(x, ((0, B_pad - B), (0, T_pad - T), (0, 0)))

    inv_len = jnp.ones((B_pad, 1), jnp.float32)
    inv_len = inv_len.at[:B, 0].set(1.0 / lengths_f)

    grid = (B_pad // B_BLK, D // D_BLK, T_pad // T_BLK)

    out = pl.pallas_call(
        mean_pool_kernel,
        out_shape=jax.ShapeDtypeStruct((B_pad, D), jnp.float32),
        grid_spec=pltpu.PrefetchScalarGridSpec(
            num_scalar_prefetch=0,
            grid=grid,
            in_specs=[
                pl.BlockSpec((B_BLK, T_BLK, D_BLK), lambda b, d, t: (b, t, d)),
                pl.BlockSpec((B_BLK, 1), lambda b, d, t: (b, 0)),
            ],
            out_specs=pl.BlockSpec((B_BLK, D_BLK), lambda b, d, t: (b, d)),
            scratch_shapes=[pltpu.VMEM((B_BLK, D_BLK), jnp.float32)],
        ),
        compiler_params=pltpu.CompilerParams(
            dimension_semantics=("parallel", "parallel", "arbitrary")),
    )(x, inv_len)

    out = out[:B].reshape(B, 1, D)
    if not batch_first:
        out = jnp.swapaxes(out, 0, 1)      # -> (1, B, D), time_dim=0 keepdim
    return out


if __name__ == "__main__":
    key = jax.random.PRNGKey(0)
    kx, ky = jax.random.split(key)

    # Case 1: batch_first=True, (B, T, D) -> (B, 1, D)
    B, T, D = 2, 8, 32
    x = jax.random.normal(kx, (B, T, D), dtype=jnp.float32)
    lengths = jnp.array([5, 8], dtype=jnp.int32)

    out_bf = mean_pooling(x, lengths, batch_first=True)
    jax.block_until_ready(out_bf)
    ref_bf = x.sum(axis=1, keepdims=True) / lengths.reshape(B, 1, 1).astype(jnp.float32)
    assert out_bf.shape == (B, 1, D)
    assert jnp.allclose(out_bf, ref_bf, atol=1e-5, rtol=1e-5)

    # Case 2: batch_first=False, (T, B, D) -> (1, B, D)
    x_tb = jnp.swapaxes(x, 0, 1)
    out_tb = mean_pooling(x_tb, lengths, batch_first=False)
    jax.block_until_ready(out_tb)
    ref_tb = x_tb.sum(axis=0, keepdims=True) / lengths.reshape(1, B, 1).astype(jnp.float32)
    assert out_tb.shape == (1, B, D)
    assert jnp.allclose(out_tb, ref_tb, atol=1e-5, rtol=1e-5)

    # Case 3: exercise B packing/padding and the multi-block T reduction path
    # (tiny max_block_bytes forces T_BLK=8 -> 3 reduction steps, B_pad=16).
    B2, T2, D2 = 10, 24, 32
    x2 = jax.random.normal(ky, (B2, T2, D2), dtype=jnp.float32)
    lengths2 = (jnp.arange(B2, dtype=jnp.int32) % T2) + 1
    out2 = mean_pooling(x2, lengths2, batch_first=True, max_block_bytes=4096)
    jax.block_until_ready(out2)
    ref2 = x2.sum(axis=1, keepdims=True) / lengths2.reshape(B2, 1, 1).astype(jnp.float32)
    assert out2.shape == (B2, 1, D2)
    assert jnp.allclose(out2, ref2, atol=1e-5, rtol=1e-5)

    print("KERNEL_OK")
</pallas_src>

<mosaic_0001>
module attributes {stable_mosaic.version = 11 : i64} {
  func.func @mean_pool_kernel(%arg0: i32, %arg1: i32, %arg2: i32, %arg3: memref<2x8x32xf32, #tpu.memory_space<vmem>>, %arg4: memref<2x1xf32, #tpu.memory_space<vmem>>, %arg5: memref<2x32xf32, #tpu.memory_space<vmem>>, %arg6: memref<2x32xf32, #tpu.memory_space<vmem>>) attributes {dimension_semantics = [#tpu.dimension_semantics<parallel>, #tpu.dimension_semantics<parallel>, #tpu.dimension_semantics<arbitrary>], iteration_bounds = array<i64: 1, 1, 1>, scalar_prefetch = 0 : i64, scratch_operands = 1 : i64, tpu.core_type = #tpu.core_type<tc>, window_params = [{transform_indices = @transform_0, window_bounds = array<i64: 2, 8, 32>}, {transform_indices = @transform_1, window_bounds = array<i64: 2, 1>}, {transform_indices = @transform_2, window_bounds = array<i64: 2, 32>}]} {
    %c0_i32 = arith.constant 0 : i32
    %0 = arith.cmpi eq, %arg2, %c0_i32 : i32
    %1 = arith.extui %0 : i1 to i32
    %c0_i32_0 = arith.constant 0 : i32
    %2 = arith.cmpi ne, %1, %c0_i32_0 : i32
    scf.if %2 {
      %cst_9 = arith.constant 0.000000e+00 : f32
      %11 = vector.broadcast %cst_9 : f32 to vector<2x32xf32>
      %c0_10 = arith.constant 0 : index
      %c0_11 = arith.constant 0 : index
      %12 = vector.load %arg6[%c0_10, %c0_11] : memref<2x32xf32, #tpu.memory_space<vmem>>, vector<2x32xf32>
      tpu.vector_store %arg6[%c0_10, %c0_11], %11 {strides = array<i32>} : memref<2x32xf32, #tpu.memory_space<vmem>>, vector<2x32xf32>,
    } else {
    }
    %c0 = arith.constant 0 : index
    %c0_1 = arith.constant 0 : index
    %3 = vector.load %arg6[%c0, %c0_1] : memref<2x32xf32, #tpu.memory_space<vmem>>, vector<2x32xf32>
    %c0_2 = arith.constant 0 : index
    %c0_3 = arith.constant 0 : index
    %c0_4 = arith.constant 0 : index
    %4 = vector.load %arg3[%c0_2, %c0_3, %c0_4] : memref<2x8x32xf32, #tpu.memory_space<vmem>>, vector<2x8x32xf32>
    %cst = arith.constant dense<0.000000e+00> : vector<2x32xf32>
    %5 = vector.multi_reduction <add>, %4, %cst [1] : vector<2x8x32xf32> to vector<2x32xf32>
    %6 = arith.addf %3, %5 : vector<2x32xf32>
    %c0_5 = arith.constant 0 : index
    %c0_6 = arith.constant 0 : index
    %7 = vector.load %arg6[%c0_5, %c0_6] : memref<2x32xf32, #tpu.memory_space<vmem>>, vector<2x32xf32>
    tpu.vector_store %arg6[%c0_5, %c0_6], %6 {strides = array<i32>} : memref<2x32xf32, #tpu.memory_space<vmem>>, vector<2x32xf32>,
    %c0_i32_7 = arith.constant 0 : i32
    %8 = arith.cmpi eq, %arg2, %c0_i32_7 : i32
    %9 = arith.extui %8 : i1 to i32
    %c0_i32_8 = arith.constant 0 : i32
    %10 = arith.cmpi ne, %9, %c0_i32_8 : i32
    scf.if %10 {
      %c0_9 = arith.constant 0 : index
      %c0_10 = arith.constant 0 : index
      %11 = vector.load %arg6[%c0_9, %c0_10] : memref<2x32xf32, #tpu.memory_space<vmem>>, vector<2x32xf32>
      %c0_11 = arith.constant 0 : index
      %c0_12 = arith.constant 0 : index
      %12 = vector.load %arg4[%c0_11, %c0_12] : memref<2x1xf32, #tpu.memory_space<vmem>>, vector<2x1xf32>
      %13 = vector.broadcast %12 : vector<2x1xf32> to vector<2x32xf32>
      %14 = arith.mulf %11, %13 : vector<2x32xf32>
      %c0_13 = arith.constant 0 : index
      %c0_14 = arith.constant 0 : index
      %15 = vector.load %arg5[%c0_13, %c0_14] : memref<2x32xf32, #tpu.memory_space<vmem>>, vector<2x32xf32>
      tpu.vector_store %arg5[%c0_13, %c0_14], %14 {strides = array<i32>} : memref<2x32xf32, #tpu.memory_space<vmem>>, vector<2x32xf32>,
    } else {
    }
    return
  }
  func.func @transform_0(%arg0: i32, %arg1: i32, %arg2: i32) -> (i32, i32, i32) {
    %c0_i32 = arith.constant 0 : i32
    return %arg0, %arg2, %arg1 : i32, i32, i32
  }
  func.func @transform_1(%arg0: i32, %arg1: i32, %arg2: i32) -> (i32, i32) {
    %c0_i32 = arith.constant 0 : i32
    %c0_i32_0 = arith.constant 0 : i32
    return %arg0, %c0_i32 : i32, i32
  }
  func.func @transform_2(%arg0: i32, %arg1: i32, %arg2: i32) -> (i32, i32) {
    %c0_i32 = arith.constant 0 : i32
    return %arg0, %arg1 : i32, i32
  }
}

</mosaic_0001>

<bundles_post_ra>
// kernel: tpu_custom_call.1
= control target key start
LH: loop header
LB: loop body
LE: loop exit
PB: predicated region body
PF: predicated region fallthrough
CT: control target
= control target key end

     0   :  { %7 = vsyncpa [#allocation4], 0  ;;  %s181_s0 = inlined_call_operand.hbm [shape: f32[2,8,32], index: 0, kind: input, shape index: {}]   ;;  %s182_s1 = inlined_call_operand.vmem [shape: f32[2,1], index: 1, kind: input, shape index: {}]   ;;  %s183_s2 = inlined_call_operand.hbm [shape: f32[2,32], index: 2, kind: output, shape index: {}]  }
   0x1   :  { %8 = vsyncpa [#allocation5], 0  ;;  %s13_s11 = sshll.u32 %s181_s0, 4  ;;  %s148_s12 = smov [#allocation3]   ;;  %s14_s11 = int_to_ptr.hbm [resolvable:$true] %s13_s11 }
   0x2   :  { %s15_s13 = sshll.u32 %s148_s12, 4  ;;  %s149_s14 = smov 128   ;;  %s16_s13 = int_to_ptr.vmem [resolvable:$true] %s15_s13 }
   0x3   :  { %s150_s15 = smov 8  }
   0x4   :  { %21 = dma.hbm_to_vmem [thread:$0]  %s14_s11, 256, %s16_s13, [#allocation4], %s149_s14, %s149_s14, %s150_s15  }
   0x5   :  { %144 = dma.done.wait [#allocation4], 256  }
   0x6   :  { %145 = vsyncadd [#allocation4], 4294967040  ;;  %vm32_vm0 = vcmask 254976   ;;  %v151_v0 = vmov 0   ;;  %v152_v1 = vmov 0.0   ;;  %vm37_vm1 = vcmask 261120  }
   0x7   :  { %95 = vset.pattern.permute.xlu0 %v151_v0  ;;  %33 = vst.msk [vmem:[#allocation2] sm:$0x3] %vm32_vm0, %v152_v1  ;;  %v64_v2 = vld [vmem:[%s182_s1] sm:$0x3]  ;;  %v35_v3 = vld [vmem:[#allocation3] sm:$0xff]  ;;  %v36_v4 = vld [vmem:[#allocation3 + $0x8] sm:$0xff] }
   0x8   :  { %67 = vperm.xlu0 %95, %v64_v2   ;;  %v38_v5 = vsel %vm37_vm1, %v35_v3, 0.0  ;;  %v45_v6 = vsel %vm37_vm1, %v36_v4, 0.0  ;;  %vm54_vm2 = vcmask 1041409   ;;  %s153_s0 = smov [#allocation6]   ;;  %s79_s20 = sshll.u32 %s183_s2, 4  ;;  %s80_s20 = int_to_ptr.hbm [resolvable:$true] %s79_s20 }
   0x9   :  { %v39_v7 = vrot.slane %v38_v5, 4  ;;  %v46_v8 = vrot.slane %v45_v6, 4  ;;  %s77_s1 = sshll.u32 %s153_s0, 4  ;;  %s78_s1 = int_to_ptr.vmem [resolvable:$true] %s77_s1 }
   0xb   :  { %v40_v9 = vadd.f32 %v39_v7, %v38_v5  ;;  %v47_v10 = vadd.f32 %v46_v8, %v45_v6 }
   0xd   :  { %v41_v11 = vrot.slane %v40_v9, 2  ;;  %v48_v12 = vrot.slane %v47_v10, 2 }
   0xe   :  { %v34_v19 = vld [vmem:[#allocation2] sm:$0x3] }
   0xf   :  { %v42_v13 = vadd.f32 %v41_v11, %v40_v9  ;;  %v49_v14 = vadd.f32 %v48_v12, %v47_v10 }
  0x11   :  { %v43_v15 = vrot.slane %v42_v13, 1  ;;  %v50_v16 = vrot.slane %v49_v14, 1 }
  0x13   :  { %v44_v17 = vadd.f32 %v43_v15, %v42_v13  ;;  %v51_v18 = vadd.f32 %v50_v16, %v49_v14 }
  0x15   :  { %v55_v20 = vsel %vm54_vm2, %v51_v18, %v44_v17 }
  0x16   :  { %v57_v21 = vadd.f32 %v55_v20, %v34_v19 }
  0x18   :  { %59 = vst.msk [vmem:[#allocation2] sm:$0x3] %vm32_vm0, %v57_v21 }
  0x1f   :  { %v63_v22 = vld [vmem:[#allocation2] sm:$0x3] }
  0x7a   :  { %v68_v23 = vpop.permute.xlu0 %67 }
  0x7b   :  { %v70_v24 = vmul.f32 %v68_v23, %v63_v22 }
  0x7d   :  { %71 = vst.msk [vmem:[#allocation6] sm:$0x3] %vm32_vm0, %v70_v24 }
  0x7e   :  { %82 = dma.vmem_to_hbm [thread:$0]  %s78_s1, 32, %s80_s20, [#allocation5]  }
  0x7f   :  { %146 = dma.done.wait [#allocation5], 32  }
  0x80   :  { %147 = vsyncadd [#allocation5], 4294967264 }
  0x81   :  { %87 = vsyncpa [#allocation4], 1 }
  0x82   :  { %88 = vsyncpa [#allocation5], 1 }

</bundles_post_ra>
